<compile_context>
chip_gen: v7x
topology: tpu7x:2x2x1
jax: 0.10.0
libtpu: 0.0.40
codegen_flags: <defaults>
</compile_context>

<pallas_src>
import numpy as np
import jax
import jax.numpy as jnp
from jax.experimental import pallas as pl
from jax.experimental.pallas import tpu as pltpu

BN_EPS = 1e-5


def _make_divisible(v, divisor, min_value=None):
    if min_value is None:
        min_value = divisor
    new_v = max(min_value, int(v + divisor / 2) // divisor * divisor)
    if new_v < 0.9 * v:
        new_v += divisor
    return new_v


# ----------------------------------------------------------------------------
# host-side separable pooling / upsampling matrices (a few KB total)
# ----------------------------------------------------------------------------
def _avgpool_matrix(size, out_size, k, stride, pad):
    """A[o, i] = 1 if input index i lies inside pooling window o (within bounds)."""
    a = np.zeros((out_size, size), np.float32)
    for o in range(out_size):
        start = o * stride - pad
        for t in range(k):
            idx = start + t
            if 0 <= idx < size:
                a[o, idx] = 1.0
    return a


def _upsample_matrix(in_size, out_size):
    """Bilinear (align_corners=True) interpolation matrix U: (out_size, in_size)."""
    u = np.zeros((out_size, in_size), np.float32)
    if in_size == 1 or out_size == 1:
        u[:, 0] = 1.0
        return u
    for o in range(out_size):
        src = o * (in_size - 1) / (out_size - 1)
        lo = min(int(np.floor(src)), in_size - 2)
        frac = src - lo
        u[o, lo] += 1.0 - frac
        u[o, lo + 1] += frac
    return u


def _pick_tile(nc, row_bytes, budget=4 << 20):
    """Largest divisor of nc fitting the budget; keep >=2 grid steps when possible
    so the pipeline actually double-buffers and v7x's 2nd TensorCore gets work."""
    best = 1
    for d in range(1, nc + 1):
        if nc % d == 0 and d * row_bytes <= budget:
            best = d
    if best == nc and nc >= 2:
        for d in range(nc - 1, 0, -1):
            if nc % d == 0:
                return d
    return best


def _vmem_limit(working_bytes):
    """Scoped-VMEM limit sized to the actual working set (with headroom), capped at
    v7x's 64 MiB physical VMEM."""
    return int(min(64 << 20, max(4 << 20, 3 * working_bytes)))


# ----------------------------------------------------------------------------
# fused Pallas forward
# ----------------------------------------------------------------------------
def pa_forward(x, params, *, stride=4, pool_k=5, pool_pad=2):
    """x: (N, C, H, W) float32 -> (N, C, H, W) float32."""
    N, C, H, W = x.shape
    mip = params['w1'].shape[0]
    Hp = (H + 2 * pool_pad - pool_k) // stride + 1
    Wp = (W + 2 * pool_pad - pool_k) // stride + 1
    assert Hp * stride == H and Wp * stride == W, "PA requires H, W divisible by stride"
    NC, P, NP = N * C, Hp * Wp, N * Hp * Wp

    # --- separable pool (includes 1/k per axis) and upsample matrices (bf16) ----
    pwt = jnp.asarray((_avgpool_matrix(W, Wp, pool_k, stride, pool_pad) / pool_k).T,
                      jnp.bfloat16)                               # (W, Wp)
    pht = jnp.asarray((_avgpool_matrix(H, Hp, pool_k, stride, pool_pad) / pool_k).T,
                      jnp.bfloat16)                               # (H, Hp)
    uht = jnp.asarray(_upsample_matrix(Hp, H).T, jnp.bfloat16)    # (Hp, H)
    uwt = jnp.asarray(_upsample_matrix(Wp, W).T, jnp.bfloat16)    # (Wp, W)

    # --- packed parameters ------------------------------------------------------
    # wpk rows [0:mip]   = W1   (mip, C)   conv1 weight
    #     rows [mip:2m]  = W2^T (mip, C)   conv2 weight transposed
    wpk = jnp.concatenate([params['w1'].astype(jnp.float32),
                           params['w2'].T.astype(jnp.float32)], axis=0)   # (2*mip, C)
    cm = max(mip, C)
    vpk = jnp.zeros((4, cm), jnp.float32)                          # lane-dense rows
    vpk = vpk.at[0, :mip].set(params['b1'].astype(jnp.float32))
    vpk = vpk.at[1, :mip].set(params['bn_g'].astype(jnp.float32))
    vpk = vpk.at[2, :mip].set(params['bn_b'].astype(jnp.float32))
    vpk = vpk.at[3, :C].set(params['b2'].astype(jnp.float32))

    x3 = x.reshape(NC, H, W)
    TB = _pick_tile(NC, H * W * 4)
    grid = (NC // TB,)
    vmem_spec = pl.BlockSpec(memory_space=pltpu.MemorySpace.VMEM)

    # ======================= stage 1: separable AvgPool (gridded) ================
    def pool_kernel(x_ref, pwt_ref, pht_ref, o_ref):
        xb = x_ref[...]                                                  # (TB, H, W) f32
        # column pool: fold TB*H into the MXU M dim
        t = jnp.dot(xb.reshape(TB * H, W).astype(jnp.bfloat16), pwt_ref[...],
                    preferred_element_type=jnp.float32)                  # (TB*H, Wp)
        t = jnp.transpose(t.reshape(TB, H, Wp), (0, 2, 1))               # (TB, Wp, H)
        # row pool: fold TB*Wp into the MXU M dim
        p = jnp.dot(t.reshape(TB * Wp, H).astype(jnp.bfloat16), pht_ref[...],
                    preferred_element_type=jnp.float32)                  # (TB*Wp, Hp)
        o_ref[...] = p.reshape(TB, Wp, Hp)

    pooled = pl.pallas_call(
        pool_kernel,
        out_shape=jax.ShapeDtypeStruct((NC, Wp, Hp), jnp.float32),
        grid=grid,
        in_specs=[pl.BlockSpec((TB, H, W), lambda i: (i, 0, 0)),
                  pl.BlockSpec((W, Wp), lambda i: (0, 0)),
                  pl.BlockSpec((H, Hp), lambda i: (0, 0))],
        out_specs=pl.BlockSpec((TB, Wp, Hp), lambda i: (i, 0, 0)),
        compiler_params=pltpu.CompilerParams(
            dimension_semantics=("parallel",),
            vmem_limit_bytes=_vmem_limit(
                2 * TB * (H * W + Wp * Hp) * 4 + (W * Wp + H * Hp) * 2)),
        cost_estimate=pl.CostEstimate(
            flops=int(2 * NC * H * W * Wp + 2 * NC * Wp * H * Hp),
            transcendentals=0,
            bytes_accessed=int(4 * NC * (H * W + Wp * Hp) + 2 * (W * Wp + H * Hp))),
    )(x3, pwt, pht)

    # ====== stage 2: conv1 + BN(batch stats) + hardswish + conv2 (tiny, gridless) ===
    def mid_kernel(p_ref, w_ref, v_ref, y_ref):
        pooled3 = p_ref[...]                                             # (N, C, P) f32
        # channels-last: single fused matmuls with M = N*P, lane-dense param rows
        pnc = jnp.transpose(pooled3, (0, 2, 1)).reshape(NP, C)           # (N*P, C)
        w1 = w_ref[0:mip, :]                                             # (mip, C)
        w2t = w_ref[mip:2 * mip, :]                                      # (mip, C)
        b1 = v_ref[0:1, 0:mip]                                           # (1, mip)
        g = v_ref[1:2, 0:mip]
        b = v_ref[2:3, 0:mip]
        b2 = v_ref[3:4, 0:C]                                             # (1, C)
        # conv1 (1x1): (N*P, C) x (mip, C)^T -> (N*P, mip)
        s = jax.lax.dot_general(pnc, w1, (((1,), (1,)), ((), ())),
                                preferred_element_type=jnp.float32) + b1
        # BatchNorm2d, training-mode biased variance, single pass (sum / sum-of-squares)
        inv_cnt = 1.0 / float(NP)
        mean = jnp.sum(s, axis=0, keepdims=True) * inv_cnt
        var = jnp.maximum(jnp.sum(s * s, axis=0, keepdims=True) * inv_cnt - mean * mean,
                          0.0)
        s = (s - mean) * jax.lax.rsqrt(var + BN_EPS) * g + b
        # Hardswish: x * relu6(x + 3) / 6
        s = s * jnp.clip(s + 3.0, 0.0, 6.0) * (1.0 / 6.0)
        # conv2 (1x1): (N*P, mip) @ (mip, C) -> (N*P, C)
        y = jnp.dot(s, w2t, preferred_element_type=jnp.float32) + b2
        y_ref[...] = jnp.transpose(y.reshape(N, P, C), (0, 2, 1))        # (N, C, P)

    ymid = pl.pallas_call(
        mid_kernel,
        out_shape=jax.ShapeDtypeStruct((N, C, P), jnp.float32),
        in_specs=[vmem_spec, vmem_spec, vmem_spec],
        out_specs=vmem_spec,
        compiler_params=pltpu.CompilerParams(
            vmem_limit_bytes=_vmem_limit(4 * (4 * N * C * P + wpk.size + vpk.size))),
        cost_estimate=pl.CostEstimate(
            flops=int(4 * NP * C * mip + 12 * NP * mip),
            transcendentals=int(mip),
            bytes_accessed=int(4 * (2 * N * C * P + wpk.size + vpk.size))),
    )(pooled.reshape(N, C, P), wpk, vpk)

    # ============ stage 3: separable bilinear upsample + sigmoid gate (gridded) ======
    def gate_kernel(x_ref, y_ref, uh_ref, uw_ref, o_ref):
        xb = x_ref[...]                                                  # (TB, H, W) f32
        yv = y_ref[...]                                                  # (TB, Wp, Hp) f32
        # expand rows (Hp -> H), M = TB*Wp
        t = jnp.dot(yv.reshape(TB * Wp, Hp).astype(jnp.bfloat16), uh_ref[...],
                    preferred_element_type=jnp.float32)                  # (TB*Wp, H)
        t = jnp.transpose(t.reshape(TB, Wp, H), (0, 2, 1))               # (TB, H, Wp)
        # expand cols (Wp -> W), M = TB*H
        up = jnp.dot(t.reshape(TB * H, Wp).astype(jnp.bfloat16), uw_ref[...],
                     preferred_element_type=jnp.float32).reshape(TB, H, W)
        # sigmoid gate: exp and reciprocal both routed to the EUP slot
        scale = pl.reciprocal(1.0 + jnp.exp(-up), approx=True)
        o_ref[...] = (xb * scale).astype(o_ref.dtype)

    out3 = pl.pallas_call(
        gate_kernel,
        out_shape=jax.ShapeDtypeStruct((NC, H, W), x.dtype),
        grid=grid,
        in_specs=[pl.BlockSpec((TB, H, W), lambda i: (i, 0, 0)),
                  pl.BlockSpec((TB, Wp, Hp), lambda i: (i, 0, 0)),
                  pl.BlockSpec((Hp, H), lambda i: (0, 0)),
                  pl.BlockSpec((Wp, W), lambda i: (0, 0))],
        out_specs=pl.BlockSpec((TB, H, W), lambda i: (i, 0, 0)),
        compiler_params=pltpu.CompilerParams(
            dimension_semantics=("parallel",),
            vmem_limit_bytes=_vmem_limit(
                2 * TB * (2 * H * W + Wp * Hp) * 4 + (Hp * H + Wp * W) * 2)),
        cost_estimate=pl.CostEstimate(
            flops=int(2 * NC * Wp * Hp * H + 2 * NC * Wp * H * W + 4 * NC * H * W),
            transcendentals=int(2 * NC * H * W),
            bytes_accessed=int(4 * NC * (2 * H * W + Wp * Hp) + 2 * (Hp * H + Wp * W))),
    )(x3, ymid.reshape(NC, Wp, Hp), uht, uwt)

    return out3.reshape(N, C, H, W)


# ----------------------------------------------------------------------------
# plain-JAX reference mirroring the PyTorch module (independent code path)
# ----------------------------------------------------------------------------
def _bilinear_upsample_align_corners(x, out_h, out_w):
    n, c, h, w = x.shape
    ys = jnp.linspace(0.0, h - 1.0, out_h)
    xs = jnp.linspace(0.0, w - 1.0, out_w)
    y0 = jnp.clip(jnp.floor(ys).astype(jnp.int32), 0, h - 1)
    x0 = jnp.clip(jnp.floor(xs).astype(jnp.int32), 0, w - 1)
    y1 = jnp.minimum(y0 + 1, h - 1)
    x1 = jnp.minimum(x0 + 1, w - 1)
    wy = (ys - y0.astype(ys.dtype))[None, None, :, None]
    wx = (xs - x0.astype(xs.dtype))[None, None, None, :]
    top = x[:, :, y0, :]
    bot = x[:, :, y1, :]
    rows = top * (1.0 - wy) + bot * wy
    left = rows[:, :, :, x0]
    right = rows[:, :, :, x1]
    return left * (1.0 - wx) + right * wx


def reference_forward(x, p):
    n, c, h, w = x.shape
    s = jax.lax.reduce_window(x, 0.0, jax.lax.add,
                              window_dimensions=(1, 1, 5, 5),
                              window_strides=(1, 1, 4, 4),
                              padding=((0, 0), (0, 0), (2, 2), (2, 2)))
    pooled = s / 25.0
    y = jnp.einsum('mc,nchw->nmhw', p['w1'], pooled) + p['b1'][None, :, None, None]
    mean = jnp.mean(y, axis=(0, 2, 3), keepdims=True)
    var = jnp.mean((y - mean) ** 2, axis=(0, 2, 3), keepdims=True)
    y = (y - mean) / jnp.sqrt(var + BN_EPS)
    y = y * p['bn_g'][None, :, None, None] + p['bn_b'][None, :, None, None]
    y = y * jnp.clip(y + 3.0, 0.0, 6.0) / 6.0
    y = jnp.einsum('cm,nmhw->nchw', p['w2'], y) + p['b2'][None, :, None, None]
    y = _bilinear_upsample_align_corners(y, h, w)
    return x * jax.nn.sigmoid(y)


if __name__ == "__main__":
    # small shapes consistent with PA: x (N, inp, H, W); stride=4, reduction=16
    N, C, H, W = 2, 4, 16, 16
    stride, reduction = 4, 16
    mip = _make_divisible(C // reduction, 8)   # -> 8

    key = jax.random.PRNGKey(0)
    kx, k1, k2, k3, k4 = jax.random.split(key, 5)
    x = jax.random.normal(kx, (N, C, H, W), jnp.float32)
    params = dict(
        w1=jax.random.normal(k1, (mip, C), jnp.float32) * 0.3,   # Conv2d(inp->mip, 1x1)
        b1=jax.random.normal(k2, (mip,), jnp.float32) * 0.1,
        bn_g=jnp.ones((mip,), jnp.float32),                      # BatchNorm2d defaults
        bn_b=jnp.zeros((mip,), jnp.float32),
        w2=jax.random.normal(k3, (C, mip), jnp.float32) * 0.3,   # Conv2d(mip->inp, 1x1)
        b2=jax.random.normal(k4, (C,), jnp.float32) * 0.1,
    )

    out = jax.block_until_ready(pa_forward(x, params, stride=stride))
    ref = reference_forward(x, params)
    assert out.shape == (N, C, H, W)

    # bf16 MXU operands (f32 accumulation) + approx EUP reciprocal -> tolerance is
    # looser than pure-f32 (per perf review); still far below any real-bug error.
    max_err = float(jnp.max(jnp.abs(out - ref)))
    mean_err = float(jnp.mean(jnp.abs(out - ref)))
    assert max_err < 5e-2 and mean_err < 5e-3, \
        f"mismatch vs JAX reference: max_abs_err={max_err}, mean_abs_err={mean_err}"

    print("KERNEL_OK")
</pallas_src>

<mosaic_0001>
module attributes {stable_mosaic.version = 11 : i64} {
  func.func @pool_kernel(%arg0: i32, %arg1: memref<4x16x16xf32, #tpu.memory_space<vmem>>, %arg2: memref<16x4xbf16, #tpu.memory_space<vmem>>, %arg3: memref<16x4xbf16, #tpu.memory_space<vmem>>, %arg4: memref<4x4x4xf32, #tpu.memory_space<vmem>>) attributes {dimension_semantics = [#tpu.dimension_semantics<parallel>], iteration_bounds = array<i64: 2>, scalar_prefetch = 0 : i64, scratch_operands = 0 : i64, tpu.core_type = #tpu.core_type<tc>, window_params = [{transform_indices = @transform_0, window_bounds = array<i64: 4, 16, 16>}, {pipeline_mode = #tpu.pipeline_mode<synchronous>, transform_indices = @transform_1, window_bounds = array<i64: 16, 4>}, {pipeline_mode = #tpu.pipeline_mode<synchronous>, transform_indices = @transform_2, window_bounds = array<i64: 16, 4>}, {transform_indices = @transform_3, window_bounds = array<i64: 4, 4, 4>}]} {
    %c0 = arith.constant 0 : index
    %c0_0 = arith.constant 0 : index
    %c0_1 = arith.constant 0 : index
    %0 = vector.load %arg1[%c0, %c0_0, %c0_1] : memref<4x16x16xf32, #tpu.memory_space<vmem>>, vector<4x16x16xf32>
    %1 = vector.shape_cast %0 : vector<4x16x16xf32> to vector<64x16xf32>
    %2 = arith.truncf %1 : vector<64x16xf32> to vector<64x16xbf16>
    %c0_2 = arith.constant 0 : index
    %c0_3 = arith.constant 0 : index
    %3 = vector.load %arg2[%c0_2, %c0_3] : memref<16x4xbf16, #tpu.memory_space<vmem>>, vector<16x4xbf16>
    %cst = arith.constant dense<0.000000e+00> : vector<64x4xf32>
    %4 = tpu.matmul %2, %3, %cst {dimension_numbers = #tpu.dot_dimension_numbers<[1], [0], [0], [1], [0, 0, 1, 1], [], []>} : vector<64x16xbf16>, vector<16x4xbf16>, vector<64x4xf32> -> vector<64x4xf32>
    %5 = vector.shape_cast %4 : vector<64x4xf32> to vector<4x16x4xf32>
    %6 = tpu.transpose %5, [0, 2, 1] : vector<4x16x4xf32> -> vector<4x4x16xf32>
    %7 = vector.shape_cast %6 : vector<4x4x16xf32> to vector<16x16xf32>
    %8 = arith.truncf %7 : vector<16x16xf32> to vector<16x16xbf16>
    %c0_4 = arith.constant 0 : index
    %c0_5 = arith.constant 0 : index
    %9 = vector.load %arg3[%c0_4, %c0_5] : memref<16x4xbf16, #tpu.memory_space<vmem>>, vector<16x4xbf16>
    %cst_6 = arith.constant dense<0.000000e+00> : vector<16x4xf32>
    %10 = tpu.matmul %8, %9, %cst_6 {dimension_numbers = #tpu.dot_dimension_numbers<[1], [0], [0], [1], [0, 0, 1, 1], [], []>} : vector<16x16xbf16>, vector<16x4xbf16>, vector<16x4xf32> -> vector<16x4xf32>
    %11 = vector.shape_cast %10 : vector<16x4xf32> to vector<4x4x4xf32>
    %c0_7 = arith.constant 0 : index
    %c0_8 = arith.constant 0 : index
    %c0_9 = arith.constant 0 : index
    %12 = vector.load %arg4[%c0_7, %c0_8, %c0_9] : memref<4x4x4xf32, #tpu.memory_space<vmem>>, vector<4x4x4xf32>
    tpu.vector_store %arg4[%c0_7, %c0_8, %c0_9], %11 {strides = array<i32>} : memref<4x4x4xf32, #tpu.memory_space<vmem>>, vector<4x4x4xf32>,
    return
  }
  func.func @transform_0(%arg0: i32) -> (i32, i32, i32) {
    %c0_i32 = arith.constant 0 : i32
    %c0_i32_0 = arith.constant 0 : i32
    %c0_i32_1 = arith.constant 0 : i32
    return %arg0, %c0_i32, %c0_i32_0 : i32, i32, i32
  }
  func.func @transform_1(%arg0: i32) -> (i32, i32) {
    %c0_i32 = arith.constant 0 : i32
    %c0_i32_0 = arith.constant 0 : i32
    %c0_i32_1 = arith.constant 0 : i32
    return %c0_i32, %c0_i32_0 : i32, i32
  }
  func.func @transform_2(%arg0: i32) -> (i32, i32) {
    %c0_i32 = arith.constant 0 : i32
    %c0_i32_0 = arith.constant 0 : i32
    %c0_i32_1 = arith.constant 0 : i32
    return %c0_i32, %c0_i32_0 : i32, i32
  }
  func.func @transform_3(%arg0: i32) -> (i32, i32, i32) {
    %c0_i32 = arith.constant 0 : i32
    %c0_i32_0 = arith.constant 0 : i32
    %c0_i32_1 = arith.constant 0 : i32
    return %arg0, %c0_i32, %c0_i32_0 : i32, i32, i32
  }
}

</mosaic_0001>

<bundles_post_ra>
// kernel: tpu_custom_call.1
= control target key start
LH: loop header
LB: loop body
LE: loop exit
PB: predicated region body
PF: predicated region fallthrough
CT: control target
= control target key end

     0   :  { %8 = vsyncpa [#allocation3], 0  ;;  %s860_s0 = inlined_call_operand.hbm [shape: f32[8,16,16], index: 0, kind: input, shape index: {}]   ;;  %s861_s1 = inlined_call_operand.vmem [shape: bf16[16,4], index: 1, kind: input, shape index: {}]   ;;  %s862_s2 = inlined_call_operand.vmem [shape: bf16[16,4], index: 2, kind: input, shape index: {}]   ;;  %s863_s3 = inlined_call_operand.vmem [shape: f32[8,4,4], index: 3, kind: output, shape index: {}]  }
   0x1   :  { %10 = vsyncpa [#allocation3 + $0x1], 0  ;;  %s742_s12 = smov 0   ;;  %s744_s13 = smov 0  }
   0x2   :  { %s746_s14 = smov 0   ;;  %s748_s15 = smov 0  }
   0x3 LB: > { %s560_s16 = sadd.s32 4294967295, %s715_s15   ;;  %s762_s17 = sadd.s32 1, %s715_s15   ;;  %s715_s15 = sphi %s748_s15, %s870_s15   ;;  %s711_s14 = sphi %s746_s14, %s869_s14   ;;  %s707_s13 = sphi %s744_s13, %s868_s13   ;;  %s703_s12 = sphi %s742_s12, %s867_s12  }
   0x4   : > { %s20_s18 = ssub.s32 %s715_s15, %s762_s17  ;;  %s23_s19 = sadd.s32 1, %s711_s14 }
   0x5   : > { %p21_p0 = scmp.eq.s32.totalorder %s20_s18, 0  ;;  %p30_p1 = scmp.ne.s32.totalorder %s711_s14, %s707_s13 }
   0x6   : > { %p31_p2 = scmp.eq.s32.totalorder %s715_s15, 0  ;;  %p36_p3 = scmp.ne.s32.totalorder %s707_s13, %s703_s12 }
   0x7   : > { %s772_s20 = scalar_select %p21_p0, %s711_s14, %s23_s19  }
   0x8   : > { %p32_p4 = por %p31_p2, %p30_p1  ;;  %p37_p5 = scmp.eq.s32.totalorder %s560_s16, 0 }
   0x9   : > { %p612_p6 = scmp.lt.s32.totalorder %s715_s15, 2  ;;  %s134_s22 = sand.u32 1, %s711_s14  }
   0xa   : > { %p777_p7 = por %p37_p5, %p36_p3  ;;  %s564_s23 = sshll.u32 %s134_s22, 6 }
   0xb   : > { %s582_s24 = sshll.u32 %s715_s15, 10  ;;  %s138_s28 = scalar_lea.vmem [#allocation2], %s564_s23 }
   0xc   : > { %s786_s27 = scalar_lea.hbm %s860_s0, %s582_s24  ;;  %s146_s29 = sshll.u32 %s138_s28, 4  ;;  %s788_s29 = int_to_ptr.vmem [resolvable:$true] %s146_s29 }
   0xd   : > { %p790_p8 = pnand %p612_p6, %p32_p4  ;;  %s795_s4 = scalar_lea.sflag [#allocation3], %s134_s22 }
   0xe   : > { %s651_s5 = scalar_lea.hbm %s786_s27, 1024  ;;  %s656_s8 = scalar_lea.hbm %s860_s0, 2048 }
   0xf   : > { %p652_p10 = scmp.ne.s32.totalorder %s786_s27, %s651_s5  ;;  %p653_p11 = pneg %p790_p8 }
  0x10   : > { %p657_p0 = scmp.lt.u32.totalorder %s786_s27, %s860_s0  ;;  %p658_p1 = scmp.lt.u32.totalorder %s656_s8, %s651_s5 }
  0x11   : > { %p654_p12 = pnand %p653_p11, %p652_p10  ;;  %p660_p3 = scmp.lt.u32.totalorder %s651_s5, %s786_s27 }
  0x12   : > { %p659_p2 = por %p658_p1, %p657_p0 }
  0x13   : > { %p655_p13 = pneg %p654_p12 }
  0x14   : > { %p661_p4 = por %p660_p3, %p659_p2 }
  0x16   : > { %p662_p5 = pnand %p661_p4, %p655_p13 }
  0x18   : > { %665 = shalt.err (!%p662_p5)
}
  0x19   : > { %s666_s11 = scalar_lea.vmem %s788_s29, 1024  ;;  %s717_s12 = smov [#allocation2]  }
  0x1a   : > { %p667_p6 = scmp.ne.s32.totalorder %s788_s29, %s666_s11  ;;  %s671_s18 = sshll.u32 %s717_s12, 4  ;;  %s672_s18 = int_to_ptr.vmem [resolvable:$false] %s671_s18 }
  0x1b   : > { %s673_s19 = scalar_lea.vmem %s672_s18, 2048  ;;  %p674_p9 = scmp.lt.s32.totalorder %s788_s29, %s672_s18 }
  0x1c   : > { %p669_p10 = pnand %p667_p6, %p653_p11  ;;  %p675_p0 = scmp.lt.s32.totalorder %s673_s19, %s666_s11 }
  0x1e   : > { %p670_p12 = pneg %p669_p10  ;;  %p676_p1 = por %p675_p0, %p674_p9 }
  0x20   : > { %p677_p2 = pnand %p676_p1, %p670_p12 }
  0x22   : > { %680 = shalt.err (!%p677_p2)
}
  0x23   : > { %s718_s22 = smov 128   ;;  %s719_s23 = smov 8  }
  0x24   : > { %611 = dma.hbm_to_vmem [thread:$0]  (!%p790_p8), %s786_s27, 1024, %s788_s29, %s795_s4, %s718_s22, %s718_s22, %s719_s23  }
  0x25   : > { %p154_p11 = scmp.lt.s32.totalorder %s715_s15, 3  ;;  %p866_p13 = scmp.ge.s32.totalorder %s715_s15, 1 }
  0x27   : > { %p155_p3 = pnand %p866_p13, %p154_p11 }
  0x28   : > { %s160_s24 = sand.u32 (!%p155_p3), 1, %s707_s13  }
  0x29   : > { %158 = sbr.rel (%p155_p3) target bundleno = 625 (0x271), region = 32  ;;  %s569_s25 = sshll.u32 (!%p155_p3), %s160_s24, 6 }
  0x2a   : > { %s161_s26 = scalar_lea.sflag (!%p155_p3), [#allocation3], %s160_s24  ;;  %s164_s28 = scalar_lea.vmem (!%p155_p3), [#allocation2], %s569_s25 }
  0x30   : > { %698 = dma.done.wait (%p777_p7), %s161_s26, 1024  }
  0x31   : > { %700 = vsyncadd (%p777_p7), %s161_s26, 4294966272  ;;  %v649_v0 = vld [vmem:[%s861_s1] sm:$0xff]   ;;  %v196_v2 = vld [vmem:[%s164_s28 + $0x8] sm:$0xff]  ;;  %vm215_vm0 = vcmask 130048   ;;  %v720_v22 = vmov 0.0   ;;  %vm721_vm1 = vmmov 0  }
  0x32   : > { %v195_v1 = vld [vmem:[%s164_s28] sm:$0xff]  ;;  %v197_v3 = vld [vmem:[%s164_s28 + $0x10] sm:$0xff]  ;;  %590 = vmatprep.subr.bf16.mxu0 %v649_v0  ;;  %v198_v5 = vld [vmem:[%s164_s28 + $0x18] sm:$0xff]  ;;  %600 = vmatprep.subr.bf16.mxu1 %v720_v22  ;;  %s570_s29 = sshll.u32 %s560_s16, 2  ;;  %vm488_vm2 = vcmask 27648  }
  0x33   : > { %v203_v4 = vpack.c.bf16 %v196_v2, %v195_v1  ;;  %v199_v6 = vld [vmem:[%s164_s28 + $0x20] sm:$0xff]  ;;  %v200_v7 = vld [vmem:[%s164_s28 + $0x28] sm:$0xff]  ;;  %591 = vmatpush3.bf16.msra.mxu0 %v649_v0  ;;  %v204_v8 = vpack.c.bf16 %v198_v5, %v197_v3  ;;  %v201_v10 = vld [vmem:[%s164_s28 + $0x30] sm:$0xff]  ;;  %602 = vmatprep.mubr.msk.bf16.mxu1 %vm721_vm1, %v720_v22  ;;  %p189_p7 = scmp.lt.s32.totalorder %s570_s29, 7 }
  0x34   : > { %v205_v9 = vpack.c.bf16 %v200_v7, %v199_v6  ;;  %v202_v11 = vld [vmem:[%s164_s28 + $0x38] sm:$0xff]  ;;  %v650_v20 = vld [vmem:[%s862_s2] sm:$0xff]  }
  0x35   : > { %592 = vmatprep.mubr.msk.bf16.mxu0 %vm215_vm0, %v203_v4  ;;  %v206_v12 = vpack.c.bf16 %v202_v11, %v201_v10  ;;  %601 = vmatpush3.bf16.msra.mxu1 %v650_v20  ;;  %s872_s29 = smov (!%p189_p7, %s570_s29), 7 }
  0x36   : > { %593 = vmatmul.mubr.msk.bf16.vlgmr.msra.gmra.mrb[0].mxu0 %vm215_vm0, %v204_v8  ;;  %s571_s30 = sshll.u32 %s872_s29, 2 }
  0x37   : > { %596 = vmatprep.mubr.msk.bf16.mxu0 %vm215_vm0, %v205_v9  ;;  %s192_s8 = scalar_lea.vmem %s863_s3, %s571_s30 }
  0x3e   : > { %597 = vmatmul.mubr.msk.bf16.gmra.mrb[4].mxu0 %vm215_vm0, %v206_v12 }
 0x109   : > { %v594_v13 = vpop.f32.mrb[0].mxu0 }
 0x10a   : > { %325 = vxpose.xlu1.b32.start [1/2] (short) (narrow) %v594_v13, 8  ;;  %v262_v14 = vpop.f32.mrb[1].mxu0 }
 0x10b   : > { %293 = vxpose.xlu0.b32.start [1/2] (short) (narrow) %v262_v14, 8  ;;  %v595_v15 = vpop.f32.mrb[2].mxu0 }
 0x10c   : > { %v265_v16 = vpop.f32.mrb[3].mxu0 }
 0x10e   : > { %326 = vxpose.xlu1.b32.end [2/2] (short) (narrow) %v595_v15, 8 }
 0x10f   : > { %294 = vxpose.xlu0.b32.end [2/2] (short) (narrow) %v265_v16, 8 }
 0x111   : > { %v598_v17 = vpop.f32.mrb[4].mxu0 }
 0x112   : > { %389 = vxpose.xlu1.b32.start [1/2] (short) (narrow) %v598_v17, 8  ;;  %v278_v18 = vpop.f32.mrb[5].mxu0 }
 0x113   : > { %357 = vxpose.xlu0.b32.start [1/2] (short) (narrow) %v278_v18, 8  ;;  %v599_v19 = vpop.f32.mrb[6].mxu0 }
 0x114   : > { %v281_v21 = vpop.f32.mrb[7].mxu0 }
 0x116   : > { %390 = vxpose.xlu1.b32.end [2/2] (short) (narrow) %v599_v19, 8 }
 0x117   : > { %358 = vxpose.xlu0.b32.end [2/2] (short) (narrow) %v281_v21, 8 }
 0x18a   : > { %v341_v23 = vpop.trf.xlu1 }
 0x18b   : > { %v309_v24 = vpop.trf.xlu0 }
 0x18c   : > { %v425_v27 = vcombine.low %v309_v24, %v341_v23 }
 0x192   : > { %v405_v25 = vpop.trf.xlu1 }
 0x193   : > { %v373_v26 = vpop.trf.xlu0 }
 0x194   : > { %v426_v28 = vcombine.low %v373_v26, %v405_v25 }
 0x196   : > { %v429_v29 = vpack.c.bf16 %v426_v28, %v425_v27 }
 0x198   : > { %603 = vmatmul.mubr.msk.bf16.vlgmr.msra.gmra.mrb[0].mxu1 %vm215_vm0, %v429_v29 }
 0x26b   : > { %v475_v30 = vpop.f32.mrb[0].mxu1 }
 0x26c   : > { %v484_v31 = vcombine.high %v475_v30, %v475_v30  ;;  %489 = vst.msk [vmem:[%s192_s8] sm:$0xf] %vm488_vm2, %v475_v30  ;;  %v604_v32 = vpop.f32.mrb[1].mxu1 }
 0x26d   : > { %v478_v33 = vpop.f32.mrb[2].mxu1 }
 0x26e   : > { %490 = vst.msk [vmem:[%s192_s8 + $0x4] sm:$0xf] %vm488_vm2, %v484_v31  ;;  %v485_v34 = vcombine.high %v478_v33, %v478_v33  ;;  %v605_v35 = vpop.f32.mrb[3].mxu1  ;;  %491 = vst.msk [vmem:[%s192_s8 + $0x8] sm:$0xf] %vm488_vm2, %v478_v33 }
 0x270   : > { %492 = vst.msk [vmem:[%s192_s8 + $0xc] sm:$0xf] %vm488_vm2, %v485_v34 }
 0x271 PF: > { %p13_p8 = scmp.ge.s32.totalorder %s762_s17, 4   ;;  %s867_s12 = smov %s707_s13 }
 0x272   : > { %s868_s13 = smov %s711_s14  ;;  %s869_s14 = smov %s772_s20 }
 0x273   : > { %s870_s15 = smov %s762_s17  ;;  %15 = sbr.rel (!%p13_p8) target bundleno = 3 (0x3), region = 72 }
 0x27a   :  { %515 = vsyncpa [#allocation3], 1 }
 0x27b   :  { %517 = vsyncpa [#allocation3 + $0x1], 1 }

</bundles_post_ra>
